<compile_context>
chip_gen: v7x
topology: tpu7x:2x2x1
jax: 0.10.0
libtpu: 0.0.40
codegen_flags: <defaults>
</compile_context>

<pallas_src>
import jax
import jax.numpy as jnp
from jax import lax
from jax.experimental import pallas as pl
from jax.experimental.pallas import tpu as pltpu


def _round_up(x, m):
    return ((x + m - 1) // m) * m


def _make_kernel(L_valid, L_pad, TQ, K, Dx, C_total, have_slab, shift, slab_dtype):
    """Kernel factory.

    Output lane layout per query row: for each k in [0, K):
      [k*W : k*W + Dx]            -> index_distance (f32)
      [k*W + Dx : k*W + Dx + C_total] -> gathered attributes (f32 accum)
    with W = Dx + C_total.
    """
    L_stride = 1 << shift
    W = Dx + C_total

    def kernel(*refs):
        idx_all_ref = refs[0]
        idx_q_ref = refs[1]
        if have_slab:
            slab_ref = refs[2]
            out_ref = refs[3]
        else:
            out_ref = refs[2]

        idx_all = idx_all_ref[0]                     # (L_pad, Dx) int32, full key table
        idx_q = idx_q_ref[0]                         # (TQ, Dx) int32, this query tile

        # distance(first_center, second_center, squared=True, ndims=1) only uses
        # column 0; sorting by squared distance == sorting by |delta|.
        c_all = idx_all[:, 0:1]                      # (L_pad, 1)
        c_q = idx_q[:, 0:1]                          # (TQ, 1)

        delta = c_q - c_all.T                        # (TQ, L_pad) int32
        m_abs = jnp.abs(delta)
        col_iota = lax.broadcasted_iota(jnp.int32, (TQ, L_pad), 1)

        # Packed sort key with a power-of-two stride: min gives both the nearest
        # neighbor column (tie-break = lowest column, i.e. stable ascending
        # argsort) and the 1-D index distance (key >> shift).
        ikey = jnp.bitwise_or(jnp.left_shift(m_abs, shift), col_iota)

        SENT = jnp.int32(jnp.iinfo(jnp.int32).max)
        if L_pad > L_valid:
            # Padded key columns can never be selected.
            ikey = jnp.where(col_iota < L_valid, ikey, SENT)

        if have_slab:
            slab = slab_ref[0]                       # (L_pad, C_slab) slab_dtype
        if Dx > 1:
            idx_q_f = idx_q.astype(jnp.float32)      # (TQ, Dx)

        ikey_work = ikey
        # K is small; Python-unrolled loop with static lane offsets. Only
        # ikey_work is carried across iterations, everything else is stored
        # immediately into the output block (bounded live ranges).
        for k in range(K):
            kmin = jnp.min(ikey_work, axis=1, keepdims=True)     # (TQ, 1) XLU reduce
            col_k = jnp.bitwise_and(kmin, L_stride - 1)          # neighbor column
            is_sel = col_iota == col_k                           # (TQ, L_pad) one-hot
            ikey_work = jnp.where(is_sel, SENT, ikey_work)

            base = k * W
            if Dx == 1:
                # index_distance comes straight from the packed key: shift, no gather.
                m_k = jnp.right_shift(kmin, shift)               # (TQ, 1)
                out_ref[0, :, base:base + 1] = m_k.astype(jnp.float32)

            if have_slab:
                sel = is_sel.astype(slab_dtype)
                g_k = jnp.dot(sel, slab, preferred_element_type=jnp.float32)
                if C_total > 0:
                    out_ref[0, :, base + Dx:base + Dx + C_total] = g_k[:, :C_total]
                if Dx > 1:
                    gidx = g_k[:, C_total:C_total + Dx]
                    out_ref[0, :, base:base + Dx] = jnp.abs(idx_q_f - gidx)

    return kernel


def _pick_tq(L):
    """Query-tile size. Capped at 128 (safe for v7x's 64 MiB VMEM); bumped to 256
    on big-VMEM chips (v5e/v6e, 128 MiB) for large L to amortize per-step
    overhead and MXU RHS reloads."""
    if L <= 128:
        return _round_up(L, 8)
    tq = 128
    try:
        info = pltpu.get_tpu_info()
        vmem = getattr(info, "vmem_capacity_bytes", 0)
        if vmem >= (100 << 20) and L >= 1024:
            tq = 256
    except Exception:
        pass
    return tq


def local_neighborhood(index, attributes, Kmax):
    """Pallas equivalent of LocalNeighborhood(coordinates=['index_distance']).forward.

    Args:
      index: (B, L, Dx) int32 sequence indices.
      attributes: list of (B, L, C_i) arrays.
      Kmax: number of neighbors (Kmax <= L).

    Returns:
      [[index_distance (B, L, Kmax, Dx) f32], attr_0 (B, L, Kmax, C_0), ...]
    """
    B, L, Dx = index.shape
    assert Kmax <= L
    attr_widths = tuple(int(a.shape[-1]) for a in attributes)
    attr_dtypes = tuple(a.dtype for a in attributes)
    n_attrs = len(attributes)
    C_total = sum(attr_widths)
    W = Dx + C_total

    # Gather slab dtype: bf16 only when every attribute is bf16 (one-hot matmul
    # with f32 accumulation keeps the gather exact); otherwise f32.
    # TODO(synk): int32 attributes round-trip through f32 (exact only < 2^24).
    if n_attrs > 0 and Dx == 1 and all(d == jnp.bfloat16 for d in attr_dtypes):
        slab_dtype = jnp.bfloat16
    else:
        slab_dtype = jnp.float32

    # Query-row tiling / L padding (no O(L^2) tq=L fallback).
    tq = _pick_tq(L)
    L_pad = _round_up(L, tq)
    n_q = L_pad // tq
    pad = L_pad - L

    # Power-of-two packed-key stride (decode is shift/AND).
    L_stride = int(pl.next_power_of_2(L_pad))
    shift = L_stride.bit_length() - 1
    # NOTE: exact selection requires max|index delta| * L_stride < 2^31.

    index_p = jnp.pad(index, ((0, 0), (0, pad), (0, 0))) if pad else index

    # Fused gather RHS built ONCE in the wrapper (not per grid step): all
    # attributes pre-cast to slab_dtype, plus the index columns when Dx > 1.
    slab_parts = [a.astype(slab_dtype) for a in attributes]
    if Dx > 1:
        slab_parts.append(index.astype(slab_dtype))
    C_slab = C_total + (Dx if Dx > 1 else 0)
    have_slab = C_slab > 0
    operands = [index_p, index_p]
    if have_slab:
        slab = slab_parts[0] if len(slab_parts) == 1 else jnp.concatenate(slab_parts, axis=-1)
        if pad:
            slab = jnp.pad(slab, ((0, 0), (0, pad), (0, 0)))
        operands.append(slab)

    in_specs = [
        pl.BlockSpec((1, L_pad, Dx), lambda b, q: (b, 0, 0)),   # full key index table
        pl.BlockSpec((1, tq, Dx), lambda b, q: (b, q, 0)),      # query-row index tile
    ]
    if have_slab:
        in_specs.append(pl.BlockSpec((1, L_pad, C_slab), lambda b, q: (b, 0, 0)))

    # Single fused, lane-dense output: (B, L_pad, Kmax*(Dx + C_total)) f32.
    out_shape = jax.ShapeDtypeStruct((B, L_pad, Kmax * W), jnp.float32)
    out_specs = pl.BlockSpec((1, tq, Kmax * W), lambda b, q: (b, q, 0))

    # VMEM budget (double-buffered inputs/outputs + ~8 (tq, L_pad) i32 temporaries).
    slab_item = jnp.dtype(slab_dtype).itemsize
    vmem_need = (
        2 * (L_pad * Dx * 4 + tq * Dx * 4 + (L_pad * C_slab * slab_item if have_slab else 0))
        + 2 * (tq * Kmax * W * 4)
        + 8 * tq * L_pad * 4
    )
    vmem_limit = int(min(64 << 20, max(32 << 20, 2 * vmem_need)))

    # Advisory cost: K one-hot matmuls per tile + selection VPU/XLU work.
    flops = 2 * B * L_pad * Kmax * L_pad * max(C_slab, 1) + 10 * B * Kmax * L_pad * L_pad
    bytes_accessed = (
        2 * index_p.size * 4
        + (int(slab.size) * slab_item if have_slab else 0)
        + B * L_pad * Kmax * W * 4
    )
    cost = pl.CostEstimate(flops=int(flops), transcendentals=0,
                           bytes_accessed=int(bytes_accessed))

    out = pl.pallas_call(
        _make_kernel(L, L_pad, tq, Kmax, Dx, C_total, have_slab, shift, slab_dtype),
        out_shape=out_shape,
        grid_spec=pltpu.PrefetchScalarGridSpec(
            num_scalar_prefetch=0,
            grid=(B, n_q),
            in_specs=in_specs,
            out_specs=out_specs,
        ),
        compiler_params=pltpu.CompilerParams(
            dimension_semantics=("parallel", "parallel"),
            vmem_limit_bytes=vmem_limit,
        ),
        cost_estimate=cost,
    )(*operands)

    # Free-ish wrapper-side split/reshape of the fused slab.
    out = out[:, :L]                                   # drop padded query rows
    out4 = out.reshape(B, L, Kmax, W)
    index_distance = out4[..., :Dx]                    # f32, matches torch .abs().float()
    nb_attrs = []
    off = Dx
    for w, dt in zip(attr_widths, attr_dtypes):
        nb_attrs.append(out4[..., off:off + w].astype(dt))
        off += w
    return [[index_distance]] + nb_attrs


def _reference(index, attributes, Kmax):
    # Pure-JAX reference mirroring the PyTorch forward.
    idx_f = index.astype(jnp.float32)
    c = idx_f[..., 0]
    d_sq = (c[:, :, None] - c[:, None, :]) ** 2
    neighbors = jnp.argsort(d_sq, axis=-1, stable=True)[:, :, :Kmax]       # (B, L, K)
    gathered_idx = jnp.take_along_axis(
        idx_f[:, None, :, :], neighbors[..., None], axis=2
    )                                                                       # (B, L, K, Dx)
    index_distance = jnp.abs(idx_f[:, :, None, :] - gathered_idx)
    nb_attrs = [
        jnp.take_along_axis(a[:, None, :, :], neighbors[..., None], axis=2)
        for a in attributes
    ]
    return [[index_distance]] + nb_attrs


if __name__ == "__main__":
    B, L, Kmax = 2, 16, 8
    key = jax.random.PRNGKey(0)
    k1, k2, k3 = jax.random.split(key, 3)

    index = jax.random.randint(k1, (B, L, 1), 0, 64, dtype=jnp.int32)
    attr0 = jax.random.normal(k2, (B, L, 32), dtype=jnp.float32)
    attr1 = jax.random.normal(k3, (B, L, 8), dtype=jnp.float32)
    attributes = [attr0, attr1]

    out = local_neighborhood(index, attributes, Kmax)
    jax.block_until_ready(out)

    ref = _reference(index, attributes, Kmax)
    assert jnp.allclose(out[0][0], ref[0][0], atol=1e-5)
    assert jnp.allclose(out[1], ref[1], atol=1e-5)
    assert jnp.allclose(out[2], ref[2], atol=1e-5)

    print("KERNEL_OK")
</pallas_src>

<mosaic_0001>
module attributes {stable_mosaic.version = 11 : i64} {
  func.func @kernel(%arg0: i32, %arg1: i32, %arg2: memref<1x16x1xi32, #tpu.memory_space<vmem>>, %arg3: memref<1x16x1xi32, #tpu.memory_space<vmem>>, %arg4: memref<1x16x40xf32, #tpu.memory_space<vmem>>, %arg5: memref<1x16x328xf32, #tpu.memory_space<vmem>>) attributes {dimension_semantics = [#tpu.dimension_semantics<parallel>, #tpu.dimension_semantics<parallel>], iteration_bounds = array<i64: 2, 1>, scalar_prefetch = 0 : i64, scratch_operands = 0 : i64, tpu.core_type = #tpu.core_type<tc>, window_params = [{transform_indices = @transform_0, window_bounds = array<i64: 1, 16, 1>}, {transform_indices = @transform_1, window_bounds = array<i64: 1, 16, 1>}, {transform_indices = @transform_2, window_bounds = array<i64: 1, 16, 40>}, {transform_indices = @transform_3, window_bounds = array<i64: 1, 16, 328>}]} {
    %c0 = arith.constant 0 : index
    %c0_0 = arith.constant 0 : index
    %c0_1 = arith.constant 0 : index
    %0 = vector.load %arg2[%c0, %c0_0, %c0_1] : memref<1x16x1xi32, #tpu.memory_space<vmem>>, vector<1x16x1xi32>
    %1 = vector.shape_cast %0 : vector<1x16x1xi32> to vector<16x1xi32>
    %c0_2 = arith.constant 0 : index
    %c0_3 = arith.constant 0 : index
    %c0_4 = arith.constant 0 : index
    %2 = vector.load %arg3[%c0_2, %c0_3, %c0_4] : memref<1x16x1xi32, #tpu.memory_space<vmem>>, vector<1x16x1xi32>
    %3 = vector.shape_cast %2 : vector<1x16x1xi32> to vector<16x1xi32>
    %4 = tpu.transpose %1, [1, 0] : vector<16x1xi32> -> vector<1x16xi32>
    %5 = vector.broadcast %3 : vector<16x1xi32> to vector<16x16xi32>
    %6 = vector.broadcast %4 : vector<1x16xi32> to vector<16x16xi32>
    %7 = arith.subi %5, %6 : vector<16x16xi32>
    %8 = math.absi %7 : vector<16x16xi32>
    %9 = tpu.iota {dimensions = array<i32: 1>} : vector<16x16xi32>
    %c4_i32 = arith.constant 4 : i32
    %10 = vector.broadcast %c4_i32 : i32 to vector<16x16xi32>
    %11 = arith.shli %8, %10 : vector<16x16xi32>
    %12 = arith.ori %11, %9 : vector<16x16xi32>
    %c0_5 = arith.constant 0 : index
    %c0_6 = arith.constant 0 : index
    %c0_7 = arith.constant 0 : index
    %13 = vector.load %arg4[%c0_5, %c0_6, %c0_7] : memref<1x16x40xf32, #tpu.memory_space<vmem>>, vector<1x16x40xf32>
    %14 = vector.shape_cast %13 : vector<1x16x40xf32> to vector<16x40xf32>
    %cst = arith.constant dense<2147483647> : vector<16xi32>
    %15 = vector.multi_reduction <minsi>, %12, %cst [1] : vector<16x16xi32> to vector<16xi32>
    %16 = vector.shape_cast %15 : vector<16xi32> to vector<16x1xi32>
    %c15_i32 = arith.constant 15 : i32
    %17 = vector.broadcast %c15_i32 : i32 to vector<16x1xi32>
    %18 = arith.andi %16, %17 : vector<16x1xi32>
    %19 = vector.broadcast %18 : vector<16x1xi32> to vector<16x16xi32>
    %20 = arith.cmpi eq, %9, %19 : vector<16x16xi32>
    %c2147483647_i32 = arith.constant 2147483647 : i32
    %21 = vector.broadcast %c2147483647_i32 : i32 to vector<16x16xi32>
    %22 = arith.select %20, %21, %12 : vector<16x16xi1>, vector<16x16xi32>
    %c4_i32_8 = arith.constant 4 : i32
    %23 = vector.broadcast %c4_i32_8 : i32 to vector<16x1xi32>
    %24 = arith.shrsi %16, %23 : vector<16x1xi32>
    %25 = arith.sitofp %24 : vector<16x1xi32> to vector<16x1xf32>
    %c0_9 = arith.constant 0 : index
    %c0_10 = arith.constant 0 : index
    %c0_11 = arith.constant 0 : index
    %26 = vector.load %arg5[%c0_9, %c0_10, %c0_11] : memref<1x16x328xf32, #tpu.memory_space<vmem>>, vector<1x16x1xf32>
    %27 = vector.shape_cast %26 : vector<1x16x1xf32> to vector<16x1xf32>
    %28 = vector.shape_cast %25 : vector<16x1xf32> to vector<1x16x1xf32>
    tpu.vector_store %arg5[%c0_9, %c0_10, %c0_11], %28 {strides = array<i32>} : memref<1x16x328xf32, #tpu.memory_space<vmem>>, vector<1x16x1xf32>,
    %29 = arith.extui %20 : vector<16x16xi1> to vector<16x16xi32>
    %30 = arith.sitofp %29 : vector<16x16xi32> to vector<16x16xf32>
    %cst_12 = arith.constant dense<0.000000e+00> : vector<16x40xf32>
    %31 = tpu.matmul %30, %14, %cst_12 {dimension_numbers = #tpu.dot_dimension_numbers<[1], [0], [0], [1], [0, 0, 1, 1], [], []>} : vector<16x16xf32>, vector<16x40xf32>, vector<16x40xf32> -> vector<16x40xf32>
    %c0_13 = arith.constant 0 : index
    %c0_14 = arith.constant 0 : index
    %c1 = arith.constant 1 : index
    %32 = vector.load %arg5[%c0_13, %c0_14, %c1] : memref<1x16x328xf32, #tpu.memory_space<vmem>>, vector<1x16x40xf32>
    %33 = vector.shape_cast %32 : vector<1x16x40xf32> to vector<16x40xf32>
    %34 = vector.shape_cast %31 : vector<16x40xf32> to vector<1x16x40xf32>
    tpu.vector_store %arg5[%c0_13, %c0_14, %c1], %34 {strides = array<i32>} : memref<1x16x328xf32, #tpu.memory_space<vmem>>, vector<1x16x40xf32>,
    %cst_15 = arith.constant dense<2147483647> : vector<16xi32>
    %35 = vector.multi_reduction <minsi>, %22, %cst_15 [1] : vector<16x16xi32> to vector<16xi32>
    %36 = vector.shape_cast %35 : vector<16xi32> to vector<16x1xi32>
    %c15_i32_16 = arith.constant 15 : i32
    %37 = vector.broadcast %c15_i32_16 : i32 to vector<16x1xi32>
    %38 = arith.andi %36, %37 : vector<16x1xi32>
    %39 = vector.broadcast %38 : vector<16x1xi32> to vector<16x16xi32>
    %40 = arith.cmpi eq, %9, %39 : vector<16x16xi32>
    %c2147483647_i32_17 = arith.constant 2147483647 : i32
    %41 = vector.broadcast %c2147483647_i32_17 : i32 to vector<16x16xi32>
    %42 = arith.select %40, %41, %22 : vector<16x16xi1>, vector<16x16xi32>
    %c4_i32_18 = arith.constant 4 : i32
    %43 = vector.broadcast %c4_i32_18 : i32 to vector<16x1xi32>
    %44 = arith.shrsi %36, %43 : vector<16x1xi32>
    %45 = arith.sitofp %44 : vector<16x1xi32> to vector<16x1xf32>
    %c0_19 = arith.constant 0 : index
    %c0_20 = arith.constant 0 : index
    %c41 = arith.constant 41 : index
    %46 = vector.load %arg5[%c0_19, %c0_20, %c41] : memref<1x16x328xf32, #tpu.memory_space<vmem>>, vector<1x16x1xf32>
    %47 = vector.shape_cast %46 : vector<1x16x1xf32> to vector<16x1xf32>
    %48 = vector.shape_cast %45 : vector<16x1xf32> to vector<1x16x1xf32>
    tpu.vector_store %arg5[%c0_19, %c0_20, %c41], %48 {strides = array<i32>} : memref<1x16x328xf32, #tpu.memory_space<vmem>>, vector<1x16x1xf32>,
    %49 = arith.extui %40 : vector<16x16xi1> to vector<16x16xi32>
    %50 = arith.sitofp %49 : vector<16x16xi32> to vector<16x16xf32>
    %cst_21 = arith.constant dense<0.000000e+00> : vector<16x40xf32>
    %51 = tpu.matmul %50, %14, %cst_21 {dimension_numbers = #tpu.dot_dimension_numbers<[1], [0], [0], [1], [0, 0, 1, 1], [], []>} : vector<16x16xf32>, vector<16x40xf32>, vector<16x40xf32> -> vector<16x40xf32>
    %c0_22 = arith.constant 0 : index
    %c0_23 = arith.constant 0 : index
    %c42 = arith.constant 42 : index
    %52 = vector.load %arg5[%c0_22, %c0_23, %c42] : memref<1x16x328xf32, #tpu.memory_space<vmem>>, vector<1x16x40xf32>
    %53 = vector.shape_cast %52 : vector<1x16x40xf32> to vector<16x40xf32>
    %54 = vector.shape_cast %51 : vector<16x40xf32> to vector<1x16x40xf32>
    tpu.vector_store %arg5[%c0_22, %c0_23, %c42], %54 {strides = array<i32>} : memref<1x16x328xf32, #tpu.memory_space<vmem>>, vector<1x16x40xf32>,
    %cst_24 = arith.constant dense<2147483647> : vector<16xi32>
    %55 = vector.multi_reduction <minsi>, %42, %cst_24 [1] : vector<16x16xi32> to vector<16xi32>
    %56 = vector.shape_cast %55 : vector<16xi32> to vector<16x1xi32>
    %c15_i32_25 = arith.constant 15 : i32
    %57 = vector.broadcast %c15_i32_25 : i32 to vector<16x1xi32>
    %58 = arith.andi %56, %57 : vector<16x1xi32>
    %59 = vector.broadcast %58 : vector<16x1xi32> to vector<16x16xi32>
    %60 = arith.cmpi eq, %9, %59 : vector<16x16xi32>
    %c2147483647_i32_26 = arith.constant 2147483647 : i32
    %61 = vector.broadcast %c2147483647_i32_26 : i32 to vector<16x16xi32>
    %62 = arith.select %60, %61, %42 : vector<16x16xi1>, vector<16x16xi32>
    %c4_i32_27 = arith.constant 4 : i32
    %63 = vector.broadcast %c4_i32_27 : i32 to vector<16x1xi32>
    %64 = arith.shrsi %56, %63 : vector<16x1xi32>
    %65 = arith.sitofp %64 : vector<16x1xi32> to vector<16x1xf32>
    %c0_28 = arith.constant 0 : index
    %c0_29 = arith.constant 0 : index
    %c82 = arith.constant 82 : index
    %66 = vector.load %arg5[%c0_28, %c0_29, %c82] : memref<1x16x328xf32, #tpu.memory_space<vmem>>, vector<1x16x1xf32>
    %67 = vector.shape_cast %66 : vector<1x16x1xf32> to vector<16x1xf32>
    %68 = vector.shape_cast %65 : vector<16x1xf32> to vector<1x16x1xf32>
    tpu.vector_store %arg5[%c0_28, %c0_29, %c82], %68 {strides = array<i32>} : memref<1x16x328xf32, #tpu.memory_space<vmem>>, vector<1x16x1xf32>,
    %69 = arith.extui %60 : vector<16x16xi1> to vector<16x16xi32>
    %70 = arith.sitofp %69 : vector<16x16xi32> to vector<16x16xf32>
    %cst_30 = arith.constant dense<0.000000e+00> : vector<16x40xf32>
    %71 = tpu.matmul %70, %14, %cst_30 {dimension_numbers = #tpu.dot_dimension_numbers<[1], [0], [0], [1], [0, 0, 1, 1], [], []>} : vector<16x16xf32>, vector<16x40xf32>, vector<16x40xf32> -> vector<16x40xf32>
    %c0_31 = arith.constant 0 : index
    %c0_32 = arith.constant 0 : index
    %c83 = arith.constant 83 : index
    %72 = vector.load %arg5[%c0_31, %c0_32, %c83] : memref<1x16x328xf32, #tpu.memory_space<vmem>>, vector<1x16x40xf32>
    %73 = vector.shape_cast %72 : vector<1x16x40xf32> to vector<16x40xf32>
    %74 = vector.shape_cast %71 : vector<16x40xf32> to vector<1x16x40xf32>
    tpu.vector_store %arg5[%c0_31, %c0_32, %c83], %74 {strides = array<i32>} : memref<1x16x328xf32, #tpu.memory_space<vmem>>, vector<1x16x40xf32>,
    %cst_33 = arith.constant dense<2147483647> : vector<16xi32>
    %75 = vector.multi_reduction <minsi>, %62, %cst_33 [1] : vector<16x16xi32> to vector<16xi32>
    %76 = vector.shape_cast %75 : vector<16xi32> to vector<16x1xi32>
    %c15_i32_34 = arith.constant 15 : i32
    %77 = vector.broadcast %c15_i32_34 : i32 to vector<16x1xi32>
    %78 = arith.andi %76, %77 : vector<16x1xi32>
    %79 = vector.broadcast %78 : vector<16x1xi32> to vector<16x16xi32>
    %80 = arith.cmpi eq, %9, %79 : vector<16x16xi32>
    %c2147483647_i32_35 = arith.constant 2147483647 : i32
    %81 = vector.broadcast %c2147483647_i32_35 : i32 to vector<16x16xi32>
    %82 = arith.select %80, %81, %62 : vector<16x16xi1>, vector<16x16xi32>
    %c4_i32_36 = arith.constant 4 : i32
    %83 = vector.broadcast %c4_i32_36 : i32 to vector<16x1xi32>
    %84 = arith.shrsi %76, %83 : vector<16x1xi32>
    %85 = arith.sitofp %84 : vector<16x1xi32> to vector<16x1xf32>
    %c0_37 = arith.constant 0 : index
    %c0_38 = arith.constant 0 : index
    %c123 = arith.constant 123 : index
    %86 = vector.load %arg5[%c0_37, %c0_38, %c123] : memref<1x16x328xf32, #tpu.memory_space<vmem>>, vector<1x16x1xf32>
    %87 = vector.shape_cast %86 : vector<1x16x1xf32> to vector<16x1xf32>
    %88 = vector.shape_cast %85 : vector<16x1xf32> to vector<1x16x1xf32>
    tpu.vector_store %arg5[%c0_37, %c0_38, %c123], %88 {strides = array<i32>} : memref<1x16x328xf32, #tpu.memory_space<vmem>>, vector<1x16x1xf32>,
    %89 = arith.extui %80 : vector<16x16xi1> to vector<16x16xi32>
    %90 = arith.sitofp %89 : vector<16x16xi32> to vector<16x16xf32>
    %cst_39 = arith.constant dense<0.000000e+00> : vector<16x40xf32>
    %91 = tpu.matmul %90, %14, %cst_39 {dimension_numbers = #tpu.dot_dimension_numbers<[1], [0], [0], [1], [0, 0, 1, 1], [], []>} : vector<16x16xf32>, vector<16x40xf32>, vector<16x40xf32> -> vector<16x40xf32>
    %c0_40 = arith.constant 0 : index
    %c0_41 = arith.constant 0 : index
    %c124 = arith.constant 124 : index
    %92 = vector.load %arg5[%c0_40, %c0_41, %c124] : memref<1x16x328xf32, #tpu.memory_space<vmem>>, vector<1x16x40xf32>
    %93 = vector.shape_cast %92 : vector<1x16x40xf32> to vector<16x40xf32>
    %94 = vector.shape_cast %91 : vector<16x40xf32> to vector<1x16x40xf32>
    tpu.vector_store %arg5[%c0_40, %c0_41, %c124], %94 {strides = array<i32>} : memref<1x16x328xf32, #tpu.memory_space<vmem>>, vector<1x16x40xf32>,
    %cst_42 = arith.constant dense<2147483647> : vector<16xi32>
    %95 = vector.multi_reduction <minsi>, %82, %cst_42 [1] : vector<16x16xi32> to vector<16xi32>
    %96 = vector.shape_cast %95 : vector<16xi32> to vector<16x1xi32>
    %c15_i32_43 = arith.constant 15 : i32
    %97 = vector.broadcast %c15_i32_43 : i32 to vector<16x1xi32>
    %98 = arith.andi %96, %97 : vector<16x1xi32>
    %99 = vector.broadcast %98 : vector<16x1xi32> to vector<16x16xi32>
    %100 = arith.cmpi eq, %9, %99 : vector<16x16xi32>
    %c2147483647_i32_44 = arith.constant 2147483647 : i32
    %101 = vector.broadcast %c2147483647_i32_44 : i32 to vector<16x16xi32>
    %102 = arith.select %100, %101, %82 : vector<16x16xi1>, vector<16x16xi32>
    %c4_i32_45 = arith.constant 4 : i32
    %103 = vector.broadcast %c4_i32_45 : i32 to vector<16x1xi32>
    %104 = arith.shrsi %96, %103 : vector<16x1xi32>
    %105 = arith.sitofp %104 : vector<16x1xi32> to vector<16x1xf32>
    %c0_46 = arith.constant 0 : index
    %c0_47 = arith.constant 0 : index
    %c164 = arith.constant 164 : index
    %106 = vector.load %arg5[%c0_46, %c0_47, %c164] : memref<1x16x328xf32, #tpu.memory_space<vmem>>, vector<1x16x1xf32>
    %107 = vector.shape_cast %106 : vector<1x16x1xf32> to vector<16x1xf32>
    %108 = vector.shape_cast %105 : vector<16x1xf32> to vector<1x16x1xf32>
    tpu.vector_store %arg5[%c0_46, %c0_47, %c164], %108 {strides = array<i32>} : memref<1x16x328xf32, #tpu.memory_space<vmem>>, vector<1x16x1xf32>,
    %109 = arith.extui %100 : vector<16x16xi1> to vector<16x16xi32>
    %110 = arith.sitofp %109 : vector<16x16xi32> to vector<16x16xf32>
    %cst_48 = arith.constant dense<0.000000e+00> : vector<16x40xf32>
    %111 = tpu.matmul %110, %14, %cst_48 {dimension_numbers = #tpu.dot_dimension_numbers<[1], [0], [0], [1], [0, 0, 1, 1], [], []>} : vector<16x16xf32>, vector<16x40xf32>, vector<16x40xf32> -> vector<16x40xf32>
    %c0_49 = arith.constant 0 : index
    %c0_50 = arith.constant 0 : index
    %c165 = arith.constant 165 : index
    %112 = vector.load %arg5[%c0_49, %c0_50, %c165] : memref<1x16x328xf32, #tpu.memory_space<vmem>>, vector<1x16x40xf32>
    %113 = vector.shape_cast %112 : vector<1x16x40xf32> to vector<16x40xf32>
    %114 = vector.shape_cast %111 : vector<16x40xf32> to vector<1x16x40xf32>
    tpu.vector_store %arg5[%c0_49, %c0_50, %c165], %114 {strides = array<i32>} : memref<1x16x328xf32, #tpu.memory_space<vmem>>, vector<1x16x40xf32>,
    %cst_51 = arith.constant dense<2147483647> : vector<16xi32>
    %115 = vector.multi_reduction <minsi>, %102, %cst_51 [1] : vector<16x16xi32> to vector<16xi32>
    %116 = vector.shape_cast %115 : vector<16xi32> to vector<16x1xi32>
    %c15_i32_52 = arith.constant 15 : i32
    %117 = vector.broadcast %c15_i32_52 : i32 to vector<16x1xi32>
    %118 = arith.andi %116, %117 : vector<16x1xi32>
    %119 = vector.broadcast %118 : vector<16x1xi32> to vector<16x16xi32>
    %120 = arith.cmpi eq, %9, %119 : vector<16x16xi32>
    %c2147483647_i32_53 = arith.constant 2147483647 : i32
    %121 = vector.broadcast %c2147483647_i32_53 : i32 to vector<16x16xi32>
    %122 = arith.select %120, %121, %102 : vector<16x16xi1>, vector<16x16xi32>
    %c4_i32_54 = arith.constant 4 : i32
    %123 = vector.broadcast %c4_i32_54 : i32 to vector<16x1xi32>
    %124 = arith.shrsi %116, %123 : vector<16x1xi32>
    %125 = arith.sitofp %124 : vector<16x1xi32> to vector<16x1xf32>
    %c0_55 = arith.constant 0 : index
    %c0_56 = arith.constant 0 : index
    %c205 = arith.constant 205 : index
    %126 = vector.load %arg5[%c0_55, %c0_56, %c205] : memref<1x16x328xf32, #tpu.memory_space<vmem>>, vector<1x16x1xf32>
    %127 = vector.shape_cast %126 : vector<1x16x1xf32> to vector<16x1xf32>
    %128 = vector.shape_cast %125 : vector<16x1xf32> to vector<1x16x1xf32>
    tpu.vector_store %arg5[%c0_55, %c0_56, %c205], %128 {strides = array<i32>} : memref<1x16x328xf32, #tpu.memory_space<vmem>>, vector<1x16x1xf32>,
    %129 = arith.extui %120 : vector<16x16xi1> to vector<16x16xi32>
    %130 = arith.sitofp %129 : vector<16x16xi32> to vector<16x16xf32>
    %cst_57 = arith.constant dense<0.000000e+00> : vector<16x40xf32>
    %131 = tpu.matmul %130, %14, %cst_57 {dimension_numbers = #tpu.dot_dimension_numbers<[1], [0], [0], [1], [0, 0, 1, 1], [], []>} : vector<16x16xf32>, vector<16x40xf32>, vector<16x40xf32> -> vector<16x40xf32>
    %c0_58 = arith.constant 0 : index
    %c0_59 = arith.constant 0 : index
    %c206 = arith.constant 206 : index
    %132 = vector.load %arg5[%c0_58, %c0_59, %c206] : memref<1x16x328xf32, #tpu.memory_space<vmem>>, vector<1x16x40xf32>
    %133 = vector.shape_cast %132 : vector<1x16x40xf32> to vector<16x40xf32>
    %134 = vector.shape_cast %131 : vector<16x40xf32> to vector<1x16x40xf32>
    tpu.vector_store %arg5[%c0_58, %c0_59, %c206], %134 {strides = array<i32>} : memref<1x16x328xf32, #tpu.memory_space<vmem>>, vector<1x16x40xf32>,
    %cst_60 = arith.constant dense<2147483647> : vector<16xi32>
    %135 = vector.multi_reduction <minsi>, %122, %cst_60 [1] : vector<16x16xi32> to vector<16xi32>
    %136 = vector.shape_cast %135 : vector<16xi32> to vector<16x1xi32>
    %c15_i32_61 = arith.constant 15 : i32
    %137 = vector.broadcast %c15_i32_61 : i32 to vector<16x1xi32>
    %138 = arith.andi %136, %137 : vector<16x1xi32>
    %139 = vector.broadcast %138 : vector<16x1xi32> to vector<16x16xi32>
    %140 = arith.cmpi eq, %9, %139 : vector<16x16xi32>
    %c2147483647_i32_62 = arith.constant 2147483647 : i32
    %141 = vector.broadcast %c2147483647_i32_62 : i32 to vector<16x16xi32>
    %142 = arith.select %140, %141, %122 : vector<16x16xi1>, vector<16x16xi32>
    %c4_i32_63 = arith.constant 4 : i32
    %143 = vector.broadcast %c4_i32_63 : i32 to vector<16x1xi32>
    %144 = arith.shrsi %136, %143 : vector<16x1xi32>
    %145 = arith.sitofp %144 : vector<16x1xi32> to vector<16x1xf32>
    %c0_64 = arith.constant 0 : index
    %c0_65 = arith.constant 0 : index
    %c246 = arith.constant 246 : index
    %146 = vector.load %arg5[%c0_64, %c0_65, %c246] : memref<1x16x328xf32, #tpu.memory_space<vmem>>, vector<1x16x1xf32>
    %147 = vector.shape_cast %146 : vector<1x16x1xf32> to vector<16x1xf32>
    %148 = vector.shape_cast %145 : vector<16x1xf32> to vector<1x16x1xf32>
    tpu.vector_store %arg5[%c0_64, %c0_65, %c246], %148 {strides = array<i32>} : memref<1x16x328xf32, #tpu.memory_space<vmem>>, vector<1x16x1xf32>,
    %149 = arith.extui %140 : vector<16x16xi1> to vector<16x16xi32>
    %150 = arith.sitofp %149 : vector<16x16xi32> to vector<16x16xf32>
    %cst_66 = arith.constant dense<0.000000e+00> : vector<16x40xf32>
    %151 = tpu.matmul %150, %14, %cst_66 {dimension_numbers = #tpu.dot_dimension_numbers<[1], [0], [0], [1], [0, 0, 1, 1], [], []>} : vector<16x16xf32>, vector<16x40xf32>, vector<16x40xf32> -> vector<16x40xf32>
    %c0_67 = arith.constant 0 : index
    %c0_68 = arith.constant 0 : index
    %c247 = arith.constant 247 : index
    %152 = vector.load %arg5[%c0_67, %c0_68, %c247] : memref<1x16x328xf32, #tpu.memory_space<vmem>>, vector<1x16x40xf32>
    %153 = vector.shape_cast %152 : vector<1x16x40xf32> to vector<16x40xf32>
    %154 = vector.shape_cast %151 : vector<16x40xf32> to vector<1x16x40xf32>
    tpu.vector_store %arg5[%c0_67, %c0_68, %c247], %154 {strides = array<i32>} : memref<1x16x328xf32, #tpu.memory_space<vmem>>, vector<1x16x40xf32>,
    %cst_69 = arith.constant dense<2147483647> : vector<16xi32>
    %155 = vector.multi_reduction <minsi>, %142, %cst_69 [1] : vector<16x16xi32> to vector<16xi32>
    %156 = vector.shape_cast %155 : vector<16xi32> to vector<16x1xi32>
    %c15_i32_70 = arith.constant 15 : i32
    %157 = vector.broadcast %c15_i32_70 : i32 to vector<16x1xi32>
    %158 = arith.andi %156, %157 : vector<16x1xi32>
    %159 = vector.broadcast %158 : vector<16x1xi32> to vector<16x16xi32>
    %160 = arith.cmpi eq, %9, %159 : vector<16x16xi32>
    %c4_i32_71 = arith.constant 4 : i32
    %161 = vector.broadcast %c4_i32_71 : i32 to vector<16x1xi32>
    %162 = arith.shrsi %156, %161 : vector<16x1xi32>
    %163 = arith.sitofp %162 : vector<16x1xi32> to vector<16x1xf32>
    %c0_72 = arith.constant 0 : index
    %c0_73 = arith.constant 0 : index
    %c287 = arith.constant 287 : index
    %164 = vector.load %arg5[%c0_72, %c0_73, %c287] : memref<1x16x328xf32, #tpu.memory_space<vmem>>, vector<1x16x1xf32>
    %165 = vector.shape_cast %164 : vector<1x16x1xf32> to vector<16x1xf32>
    %166 = vector.shape_cast %163 : vector<16x1xf32> to vector<1x16x1xf32>
    tpu.vector_store %arg5[%c0_72, %c0_73, %c287], %166 {strides = array<i32>} : memref<1x16x328xf32, #tpu.memory_space<vmem>>, vector<1x16x1xf32>,
    %167 = arith.extui %160 : vector<16x16xi1> to vector<16x16xi32>
    %168 = arith.sitofp %167 : vector<16x16xi32> to vector<16x16xf32>
    %cst_74 = arith.constant dense<0.000000e+00> : vector<16x40xf32>
    %169 = tpu.matmul %168, %14, %cst_74 {dimension_numbers = #tpu.dot_dimension_numbers<[1], [0], [0], [1], [0, 0, 1, 1], [], []>} : vector<16x16xf32>, vector<16x40xf32>, vector<16x40xf32> -> vector<16x40xf32>
    %c0_75 = arith.constant 0 : index
    %c0_76 = arith.constant 0 : index
    %c288 = arith.constant 288 : index
    %170 = vector.load %arg5[%c0_75, %c0_76, %c288] : memref<1x16x328xf32, #tpu.memory_space<vmem>>, vector<1x16x40xf32>
    %171 = vector.shape_cast %170 : vector<1x16x40xf32> to vector<16x40xf32>
    %172 = vector.shape_cast %169 : vector<16x40xf32> to vector<1x16x40xf32>
    tpu.vector_store %arg5[%c0_75, %c0_76, %c288], %172 {strides = array<i32>} : memref<1x16x328xf32, #tpu.memory_space<vmem>>, vector<1x16x40xf32>,
    return
  }
  func.func @transform_0(%arg0: i32, %arg1: i32) -> (i32, i32, i32) {
    %c0_i32 = arith.constant 0 : i32
    %c0_i32_0 = arith.constant 0 : i32
    %c0_i32_1 = arith.constant 0 : i32
    return %arg0, %c0_i32, %c0_i32_0 : i32, i32, i32
  }
  func.func @transform_1(%arg0: i32, %arg1: i32) -> (i32, i32, i32) {
    %c0_i32 = arith.constant 0 : i32
    %c0_i32_0 = arith.constant 0 : i32
    return %arg0, %arg1, %c0_i32 : i32, i32, i32
  }
  func.func @transform_2(%arg0: i32, %arg1: i32) -> (i32, i32, i32) {
    %c0_i32 = arith.constant 0 : i32
    %c0_i32_0 = arith.constant 0 : i32
    %c0_i32_1 = arith.constant 0 : i32
    return %arg0, %c0_i32, %c0_i32_0 : i32, i32, i32
  }
  func.func @transform_3(%arg0: i32, %arg1: i32) -> (i32, i32, i32) {
    %c0_i32 = arith.constant 0 : i32
    %c0_i32_0 = arith.constant 0 : i32
    return %arg0, %arg1, %c0_i32 : i32, i32, i32
  }
}

</mosaic_0001>

<bundles_post_ra>
// kernel: tpu_custom_call.1
= control target key start
LH: loop header
LB: loop body
LE: loop exit
PB: predicated region body
PF: predicated region fallthrough
CT: control target
= control target key end

     0   :  { %8 = vsyncpa [#allocation3], 0  ;;  %s2257_s0 = inlined_call_operand.vmem [shape: s32[2,16,1], index: 0, kind: input, shape index: {}]   ;;  %s2258_s1 = inlined_call_operand.vmem [shape: s32[2,16,1], index: 1, kind: input, shape index: {}]   ;;  %s2259_s2 = inlined_call_operand.vmem [shape: f32[2,16,40], index: 2, kind: input, shape index: {}]   ;;  %s2260_s3 = inlined_call_operand.hbm [shape: f32[2,16,328], index: 3, kind: output, shape index: {}]  }
   0x1   :  { %10 = vsyncpa [#allocation3 + $0x1], 0  ;;  %s1893_s12 = smov 0   ;;  %s1895_s13 = smov 0  }
   0x2   :  { %s1897_s14 = smov 0   ;;  %s1899_s15 = smov 0  }
   0x3   :  { %s1901_s16 = smov 0   ;;  %s1903_s17 = smov 0  }
   0x4 LB: > { %s1539_s18 = sadd.s32 4294967295, %s1858_s17   ;;  %s1540_s19 = sadd.s32 4294967294, %s1858_s17   ;;  %s1858_s17 = sphi %s1903_s17, %s16_s17   ;;  %s1854_s16 = sphi %s1901_s16, %s2267_s16   ;;  %s1850_s15 = sphi %s1899_s15, %s2266_s15   ;;  %s1846_s14 = sphi %s1897_s14, %s2265_s14   ;;  %s1842_s13 = sphi %s1895_s13, %s2264_s13   ;;  %s1838_s12 = sphi %s1893_s12, %s2263_s12  }
   0x5   : > { %s28_s20 = sadd.s32 1, %s1854_s16  ;;  %s117_s21 = sadd.s32 1, %s1846_s14 }
   0x6   : > { %p30_p0 = scmp.ge.s32.totalorder %s28_s20, 2  ;;  %p127_p1 = scmp.ne.s32.totalorder %s1846_s14, %s1842_s13 }
   0x7   : > { %p128_p2 = scmp.eq.s32.totalorder %s1539_s18, 1  ;;  %p133_p3 = scmp.ne.s32.totalorder %s1842_s13, %s1838_s12 }
   0x8   : > { %s2269_s20 = smov (%p30_p0, %s28_s20), 0  ;;  %p134_p5 = scmp.eq.s32.totalorder %s1540_s19, 1 }
   0x9   : > { %p1933_p4 = por %p128_p2, %p127_p1  ;;  %s112_s23 = ssub.s32 %s1854_s16, %s2269_s20 }
   0xa   : > { %p1543_p6 = scmp.ge.s32.totalorder %s1858_s17, 1  ;;  %p115_p7 = scmp.eq.s32.totalorder %s112_s23, 0 }
   0xb   : > { %p1940_p8 = por %p134_p5, %p133_p3  ;;  %p181_p9 = scmp.lt.s32.totalorder %s1858_s17, 3 }
   0xc   : > { %s1946_s25 = scalar_select %p115_p7, %s1846_s14, %s117_s21  }
   0xd   : > { %p182_p10 = pnand %p1543_p6, %p181_p9 }
   0xe   : > { %p219_p11 = scmp.lt.s32.totalorder (!%p182_p10), %s1850_s15, 1  ;;  %v1860_v0 = vmov (!%p182_p10), 0   ;;  %v282_v8 = vlaneseq (!%p182_p10)  ;;  %vm302_vm0 = vcmask (!%p182_p10), 130048   ;;  %s216_s10 = sand.u32 (!%p182_p10), 1, %s1842_s13   ;;  %vm343_vm3 = vcmask (!%p182_p10), 7168  }
   0xf   : > { %185 = sbr.rel (%p182_p10) target bundleno = 2909 (0xb5d), region = 32  ;;  %1779 = vset.pattern.permute.xlu0 (!%p182_p10), %v1860_v0  ;;  %v1861_v54 = vmov (!%p182_p10), 0.0   ;;  %s1862_s19 = smov (!%p182_p10), 1  }
  0x10   : > { %v283_v9 = vshrl.u32 (!%p182_p10), %v282_v8, 7  ;;  %v1967_v19 = vand.u32 (!%p182_p10), 127, %v282_v8  ;;  %s1710_s11 = smul.u32 (!%p182_p10), 48, %s216_s10  ;;  %s1863_s21 = smov (!%p182_p10), 42  }
  0x11   : > { %s1864_s23 = smov (!%p182_p10), 83   ;;  %s1867_s28 = smov (!%p182_p10), 78  }
  0x12   : > { %v284_v10 = vsub.s32 (!%p182_p10), 0, %v283_v9  ;;  %s1980_s18 = scalar_lea.vmem (!%p182_p10), [#allocation2], %s1710_s11  ;;  %s1868_s29 = smov (!%p182_p10), 119  }
  0x13   : > { %s1711_s4 = smul.u32 (!%p182_p10), 768, %s1850_s15  ;;  %s1436_s5 = sshll.u32 (!%p182_p10), %s1980_s18, 4  ;;  %s2205_s5 = int_to_ptr.vmem [resolvable:$true] %s1436_s5 }
  0x14   : > { %s1870_s11 = smov (!%p182_p10), [#allocation2]  }
  0x15   : > { %s2203_s8 = scalar_lea.hbm (!%p182_p10), %s2260_s3, %s1711_s4 }
  0x16   : > { %s220_s26 = scalar_select %p219_p11, %s1850_s15, 1 }
  0x17   : > { %s1780_s15 = scalar_lea.vmem %s2205_s5, 768 }
  0x18   : > { %s1587_s27 = sshll.u32 %s220_s26, 4  ;;  %s1865_s26 = smov 124  }
  0x19   : > { %s232_s30 = scalar_lea.vmem %s2258_s1, %s1587_s27  ;;  %s238_s6 = scalar_lea.vmem %s2259_s2, %s1587_s27 }
  0x1a   : > { %v242_v1 = vld [vmem:[%s232_s30] sm:$0xff]  ;;  %v301_v3 = vld [vmem:[%s238_s6 + $0x8] sm:$0xff]  ;;  %s223_s9 = scalar_lea.vmem %s2257_s0, %s1587_s27  ;;  %s1866_s27 = smov 37  }
  0x1b   : > { %v300_v2 = vld [vmem:[%s238_s6] sm:$0xff]  ;;  %277 = vperm.xlu0 %1779, %v242_v1   ;;  %v243_v6 = vld [vmem:[%s232_s30 + $0x8] sm:$0xff]  ;;  %s1869_s30 = smov 32   ;;  %p1781_p12 = scmp.ne.s32.totalorder %s2205_s5, %s1780_s15 }
  0x1c   : > { %v1959_v4 = vpack.c.bf16 %v301_v3, %v300_v2  ;;  %v240_v5 = vld [vmem:[%s223_s9] sm:$0xff]  ;;  %v241_v7 = vld [vmem:[%s223_s9 + $0x8] sm:$0xff]  ;;  %s2211_s9 = scalar_lea.sflag [#allocation3], %s216_s10 }
  0x1d   : > { %244 = vxpose.xlu1.b32.start [1/2] (short) (narrow) %v240_v5, 8  ;;  %p1782_p13 = pnand %p1781_p12, %p1933_p4 }
  0x1e   : > { %1679 = vmatprep.subr.bf16.mxu0 %v1959_v4  ;;  %1683 = vmatprep.subr.bf16.mxu1 %v1959_v4 }
  0x1f   : > { %1681 = vmatpush3.bf16.msra.mxu0 %v1959_v4  ;;  %1685 = vmatpush3.bf16.msra.mxu1 %v1959_v4  ;;  %p1783_p0 = pneg %p1782_p13 }
  0x20   : > { %280 = vperm.xlu0 %1779, %v243_v6   ;;  %1687 = vmatprep.subr.bf16.mxu0 %v1959_v4 }
  0x21   : > { %245 = vxpose.xlu1.b32.end [2/2] (short) (narrow) %v241_v7, 8  ;;  %1691 = vmatprep.subr.bf16.mxu1 %v1959_v4 }
  0x9a   : > { %v278_v11 = vpop.permute.xlu0 %277 }
  0x9d   : > { %v260_v12 = vpop.trf.xlu1 }
  0x9e   : > { %v285_v13 = vrot.slane %v260_v12, %v284_v10 }
  0x9f   : > { %v281_v14 = vpop.permute.xlu0 %280 }
  0xa0   : > { %v286_v15 = vsub.s32 %v278_v11, %v285_v13  ;;  %v287_v16 = vsub.s32 %v281_v14, %v285_v13 }
  0xa2   : > { %v289_v17 = vsub.s32 0, %v286_v15  ;;  %v292_v18 = vsub.s32 0, %v287_v16 }
  0xa4   : > { %v1550_v20 = vmin.u32 %v289_v17, %v286_v15  ;;  %v1551_v21 = vmin.u32 %v292_v18, %v287_v16 }
  0xa6   : > { %v296_v22 = vshll.u32 %v1550_v20, 4  ;;  %v297_v23 = vshll.u32 %v1551_v21, 4 }
  0xa8   : > { %v298_v24 = vor.u32 %v296_v22, %v1967_v19  ;;  %v299_v25 = vor.u32 %v297_v23, %v1967_v19 }
  0xaa   : > { %v303_v26 = vsel %vm302_vm0, %v298_v24, 2147483647  ;;  %v318_v27 = vsel %vm302_vm0, %v299_v25, 2147483647 }
  0xab   : > { %v305_v28 = vshra.s32 %v303_v26, 16  ;;  %v320_v29 = vshra.s32 %v318_v27, 16  ;;  %v304_v32 = vand.u32 65535, %v303_v26  ;;  %v319_v36 = vand.u32 65535, %v318_v27 }
  0xad   : > { %v307_v30 = vcvt.s32.f32 %v305_v28  ;;  %v322_v31 = vcvt.s32.f32 %v320_v29  ;;  %v306_v35 = vcvt.s32.f32 %v304_v32  ;;  %v321_v38 = vcvt.s32.f32 %v319_v36 }
  0xaf   : > { %308 = vmin.xlane.f32.xlu0 %v307_v30  ;;  %323 = vmin.xlane.f32.xlu1 %v322_v31 }
 0x13c   : > { %v309_v33 = vpop.xlane.xlu0 %308  ;;  %v324_v34 = vpop.xlane.xlu1 %323 }
 0x13d   : > { %vm310_vm1 = vcmp.eq.f32.partialorder %v307_v30, %v309_v33  ;;  %vm325_vm2 = vcmp.eq.f32.partialorder %v322_v31, %v324_v34  ;;  %v315_v40 = vcvt.f32.s32 %v309_v33  ;;  %v330_v41 = vcvt.f32.s32 %v324_v34 }
 0x13e   : > { %v311_v37 = vsel %vm310_vm1, %v306_v35, inf  ;;  %v326_v39 = vsel %vm325_vm2, %v321_v38, inf }
 0x13f   : > { %312 = vmin.xlane.f32.xlu0 %v311_v37  ;;  %v316_v43 = vshll.u32 %v315_v40, 16  ;;  %v331_v46 = vshll.u32 %v330_v41, 16 }
 0x143   : > { %327 = vmin.xlane.f32.xlu0 %v326_v39 }
 0x1cc   : > { %v313_v42 = vpop.xlane.xlu0 %312 }
 0x1cd   : > { %v314_v44 = vcvt.f32.s32 %v313_v42 }
 0x1cf   : > { %v317_v45 = vadd.s32 %v316_v43, %v314_v44 }
 0x1d0   : > { %v328_v47 = vpop.xlane.xlu0 %327 }
 0x1d1   : > { %v339_v48 = vshra.s32 %v317_v45, 4  ;;  %v329_v49 = vcvt.f32.s32 %v328_v47  ;;  %v333_v50 = vand.u32 15, %v317_v45 }
 0x1d3   : > { %v341_v51 = vcvt.s32.f32 %v339_v48  ;;  %v332_v52 = vadd.s32 %v331_v46, %v329_v49  ;;  %vm335_vm4 = vcmp.eq.s32.totalorder %v1967_v19, %v333_v50 }
 0x1d4   : > { %v337_v53 = vsel %vm335_vm4, 2147483647, %v298_v24  ;;  %v1552_v55 = vsel %vm335_vm4, 1.0, %v1861_v54 }
 0x1d5   : > { %v334_v56 = vand.u32 15, %v332_v52  ;;  %v340_v57 = vshra.s32 %v332_v52, 4  ;;  %1626 = vmatprep.mubr.msk.f32.mxu0 %vm302_vm0, %v1552_v55  ;;  %v442_v58 = vsel %vm302_vm0, %v337_v53, 2147483647  ;;  %344 = vst.msk [vmem:[%s1980_s18] sm:$0xff] %vm343_vm3, %v341_v51 }
 0x1d6   : > { %v444_v59 = vshra.s32 %v442_v58, 16  ;;  %v443_v3 = vand.u32 65535, %v442_v58 }
 0x1d7   : > { %v342_v60 = vcvt.s32.f32 %v340_v57  ;;  %vm336_vm5 = vcmp.eq.s32.totalorder %v1967_v19, %v334_v56 }
 0x1d8   : > { %v1553_v61 = vsel %vm336_vm5, 1.0, %v1861_v54  ;;  %v446_v62 = vcvt.s32.f32 %v444_v59  ;;  %v338_v63 = vsel %vm336_vm5, 2147483647, %v299_v25  ;;  %v445_v6 = vcvt.s32.f32 %v443_v3 }
 0x1d9   : > { %1627 = vmatmul.mubr.msk.f32.vlgmr.msra.gmra.mrb[0].mxu0 %vm302_vm0, %v1553_v61  ;;  %v457_v0 = vsel %vm302_vm0, %v338_v63, 2147483647  ;;  %345 = vst.msk [vmem:[%s1980_s18 + $0x18] sm:$0xff] %vm343_vm3, %v342_v60 }
 0x1da   : > { %447 = vmin.xlane.f32.xlu0 %v446_v62  ;;  %v459_v1 = vshra.s32 %v457_v0, 16  ;;  %1689 = vmatpush3.bf16.msra.mxu0 %v1959_v4  ;;  %v458_v7 = vand.u32 65535, %v457_v0 }
 0x1db   : > { %1695 = vmatprep.subr.bf16.mxu0 %v1959_v4 }
 0x1dc   : > { %v461_v2 = vcvt.s32.f32 %v459_v1  ;;  %v460_v10 = vcvt.s32.f32 %v458_v7 }
 0x1de   : > { %462 = vmin.xlane.f32.xlu1 %v461_v2 }
 0x267   : > { %v448_v5 = vpop.xlane.xlu0 %447 }
 0x268   : > { %vm449_vm6 = vcmp.eq.f32.partialorder %v446_v62, %v448_v5  ;;  %v454_v14 = vcvt.f32.s32 %v448_v5 }
 0x269   : > { %v450_v8 = vsel %vm449_vm6, %v445_v6, inf }
 0x26a   : > { %451 = vmin.xlane.f32.xlu0 %v450_v8  ;;  %v455_v16 = vshll.u32 %v454_v14, 16 }
 0x26b   : > { %v463_v9 = vpop.xlane.xlu1 %462 }
 0x26c   : > { %vm464_vm7 = vcmp.eq.f32.partialorder %v461_v2, %v463_v9  ;;  %v469_v17 = vcvt.f32.s32 %v463_v9 }
 0x26d   : > { %v465_v11 = vsel %vm464_vm7, %v460_v10, inf }
 0x26e   : > { %466 = vmin.xlane.f32.xlu1 %v465_v11  ;;  %v470_v22 = vshll.u32 %v469_v17, 16 }
 0x2ac   : > { %v1992_v12 = vpop.f32.mrb[0].mxu0 }
 0x2ad   : > { %v1994_v13 = vpop.f32.mrb[1].mxu0 }
 0x2f7   : > { %v452_v15 = vpop.xlane.xlu0 %451 }
 0x2f8   : > { %v453_v18 = vcvt.f32.s32 %v452_v15 }
 0x2fa   : > { %v1996_v20 = vadd.s32 %v455_v16, %v453_v18 }
 0x2fb   : > { %v467_v21 = vpop.xlane.xlu1 %466 }
 0x2fc   : > { %v468_v23 = vcvt.f32.s32 %v467_v21  ;;  %v472_v24 = vand.u32 15, %v1996_v20 }
 0x2fe   : > { %v1999_v25 = vadd.s32 %v470_v22, %v468_v23  ;;  %vm474_vm8 = vcmp.eq.s32.totalorder %v1967_v19, %v472_v24 }
 0x2ff   : > { %v476_v26 = vsel %vm474_vm8, 2147483647, %v337_v53  ;;  %v1556_v27 = vsel %vm474_vm8, 1.0, %v1861_v54 }
 0x300   : > { %v473_v28 = vand.u32 15, %v1999_v25  ;;  %1633 = vmatprep.mubr.msk.f32.mxu1 %vm302_vm0, %v1556_v27  ;;  %v581_v29 = vsel %vm302_vm0, %v476_v26, 2147483647 }
 0x301   : > { %v583_v30 = vshra.s32 %v581_v29, 16  ;;  %v582_v37 = vand.u32 65535, %v581_v29 }
 0x302   : > { %vm475_vm9 = vcmp.eq.s32.totalorder %v1967_v19, %v473_v28 }
 0x303   : > { %v1557_v31 = vsel %vm475_vm9, 1.0, %v1861_v54  ;;  %v585_v32 = vcvt.s32.f32 %v583_v30  ;;  %v477_v33 = vsel %vm475_vm9, 2147483647, %v338_v63  ;;  %v584_v39 = vcvt.s32.f32 %v582_v37 }
 0x304   : > { %1634 = vmatmul.mubr.msk.f32.vlgmr.msra.gmra.mrb[0].mxu1 %vm302_vm0, %v1557_v31  ;;  %v596_v34 = vsel %vm302_vm0, %v477_v33, 2147483647 }
 0x305   : > { %586 = vmin.xlane.f32.xlu0 %v585_v32  ;;  %v598_v35 = vshra.s32 %v596_v34, 16  ;;  %1693 = vmatpush3.bf16.msra.mxu1 %v1959_v4  ;;  %v597_v40 = vand.u32 65535, %v596_v34 }
 0x306   : > { %1699 = vmatprep.subr.bf16.mxu1 %v1959_v4 }
 0x307   : > { %v600_v36 = vcvt.s32.f32 %v598_v35  ;;  %v599_v43 = vcvt.s32.f32 %v597_v40 }
 0x309   : > { %601 = vmin.xlane.f32.xlu1 %v600_v36 }
 0x392   : > { %v587_v38 = vpop.xlane.xlu0 %586 }
 0x393   : > { %vm588_vm10 = vcmp.eq.f32.partialorder %v585_v32, %v587_v38  ;;  %v593_v47 = vcvt.f32.s32 %v587_v38 }
 0x394   : > { %v589_v41 = vsel %vm588_vm10, %v584_v39, inf }
 0x395   : > { %590 = vmin.xlane.f32.xlu0 %v589_v41  ;;  %v594_v49 = vshll.u32 %v593_v47, 16 }
 0x396   : > { %v602_v42 = vpop.xlane.xlu1 %601 }
 0x397   : > { %vm603_vm11 = vcmp.eq.f32.partialorder %v600_v36, %v602_v42  ;;  %v608_v50 = vcvt.f32.s32 %v602_v42 }
 0x398   : > { %v604_v44 = vsel %vm603_vm11, %v599_v43, inf }
 0x399   : > { %605 = vmin.xlane.f32.xlu1 %v604_v44  ;;  %v609_v55 = vshll.u32 %v608_v50, 16 }
 0x3d7   : > { %v2012_v45 = vpop.f32.mrb[0].mxu1 }
 0x3d8   : > { %v2014_v46 = vpop.f32.mrb[1].mxu1 }
 0x422   : > { %v591_v48 = vpop.xlane.xlu0 %590 }
 0x423   : > { %v592_v51 = vcvt.f32.s32 %v591_v48 }
 0x425   : > { %v2016_v52 = vadd.s32 %v594_v49, %v592_v51 }
 0x426   : > { %v606_v53 = vpop.xlane.xlu1 %605 }
 0x427   : > { %v611_v56 = vand.u32 15, %v2016_v52  ;;  %v607_v57 = vcvt.f32.s32 %v606_v53 }
 0x429   : > { %v2019_v58 = vadd.s32 %v609_v55, %v607_v57  ;;  %vm613_vm12 = vcmp.eq.s32.totalorder %v1967_v19, %v611_v56 }
 0x42a   : > { %v1560_v59 = vsel %vm613_vm12, 1.0, %v1861_v54  ;;  %v615_v60 = vsel %vm613_vm12, 2147483647, %v476_v26 }
 0x42b   : > { %v612_v61 = vand.u32 15, %v2019_v58  ;;  %1640 = vmatprep.mubr.msk.f32.mxu0 %vm302_vm0, %v1560_v59  ;;  %v720_v62 = vsel %vm302_vm0, %v615_v60, 2147483647 }
 0x42c   : > { %v722_v63 = vshra.s32 %v720_v62, 16  ;;  %v721_v7 = vand.u32 65535, %v720_v62 }
 0x42d   : > { %vm614_vm13 = vcmp.eq.s32.totalorder %v1967_v19, %v612_v61 }
 0x42e   : > { %v1561_v0 = vsel %vm614_vm13, 1.0, %v1861_v54  ;;  %v724_v1 = vcvt.s32.f32 %v722_v63  ;;  %v616_v2 = vsel %vm614_vm13, 2147483647, %v477_v33  ;;  %v723_v9 = vcvt.s32.f32 %v721_v7 }
 0x42f   : > { %1641 = vmatmul.mubr.msk.f32.vlgmr.msra.gmra.mrb[2].mxu0 %vm302_vm0, %v1561_v0  ;;  %v735_v3 = vsel %vm302_vm0, %v616_v2, 2147483647 }
 0x430   : > { %725 = vmin.xlane.f32.xlu0 %v724_v1  ;;  %v737_v5 = vshra.s32 %v735_v3, 16  ;;  %1697 = vmatpush3.bf16.msra.mxu0 %v1959_v4  ;;  %v736_v10 = vand.u32 65535, %v735_v3 }
 0x431   : > { %1703 = vmatprep.subr.bf16.mxu0 %v1959_v4 }
 0x432   : > { %v739_v6 = vcvt.s32.f32 %v737_v5  ;;  %v738_v15 = vcvt.s32.f32 %v736_v10 }
 0x434   : > { %740 = vmin.xlane.f32.xlu1 %v739_v6 }
 0x4bd   : > { %v726_v8 = vpop.xlane.xlu0 %725 }
 0x4be   : > { %vm727_vm14 = vcmp.eq.f32.partialorder %v724_v1, %v726_v8  ;;  %v732_v21 = vcvt.f32.s32 %v726_v8 }
 0x4bf   : > { %v728_v11 = vsel %vm727_vm14, %v723_v9, inf }
 0x4c0   : > { %729 = vmin.xlane.f32.xlu0 %v728_v11  ;;  %v733_v23 = vshll.u32 %v732_v21, 16 }
 0x4c1   : > { %v741_v14 = vpop.xlane.xlu1 %740 }
 0x4c2   : > { %vm742_vm15 = vcmp.eq.f32.partialorder %v739_v6, %v741_v14  ;;  %v747_v24 = vcvt.f32.s32 %v741_v14 }
 0x4c3   : > { %v743_v16 = vsel %vm742_vm15, %v738_v15, inf }
 0x4c4   : > { %744 = vmin.xlane.f32.xlu1 %v743_v16  ;;  %v748_v29 = vshll.u32 %v747_v24, 16 }
 0x502   : > { %v2032_v17 = vpop.f32.mrb[2].mxu0 }
 0x503   : > { %v2034_v18 = vpop.f32.mrb[3].mxu0 }
 0x54d   : > { %v730_v22 = vpop.xlane.xlu0 %729 }
 0x54e   : > { %v731_v26 = vcvt.f32.s32 %v730_v22 }
 0x550   : > { %v2036_v27 = vadd.s32 %v733_v23, %v731_v26 }
 0x551   : > { %v745_v28 = vpop.xlane.xlu1 %744 }
 0x552   : > { %v750_v30 = vand.u32 15, %v2036_v27  ;;  %v746_v31 = vcvt.f32.s32 %v745_v28 }
 0x554   : > { %v2039_v32 = vadd.s32 %v748_v29, %v746_v31  ;;  %vm752_vm1 = vcmp.eq.s32.totalorder %v1967_v19, %v750_v30 }
 0x555   : > { %v1564_v33 = vsel %vm752_vm1, 1.0, %v1861_v54  ;;  %v754_v34 = vsel %vm752_vm1, 2147483647, %v615_v60 }
 0x556   : > { %v751_v35 = vand.u32 15, %v2039_v32  ;;  %1647 = vmatprep.mubr.msk.f32.mxu1 %vm302_vm0, %v1564_v33  ;;  %v862_v36 = vsel %vm302_vm0, %v754_v34, 2147483647 }
 0x557   : > { %v864_v37 = vshra.s32 %v862_v36, 16  ;;  %v863_v44 = vand.u32 65535, %v862_v36 }
 0x558   : > { %vm753_vm2 = vcmp.eq.s32.totalorder %v1967_v19, %v751_v35 }
 0x559   : > { %v1565_v38 = vsel %vm753_vm2, 1.0, %v1861_v54  ;;  %v866_v39 = vcvt.s32.f32 %v864_v37  ;;  %v755_v40 = vsel %vm753_vm2, 2147483647, %v616_v2  ;;  %v865_v48 = vcvt.s32.f32 %v863_v44 }
 0x55a   : > { %1648 = vmatmul.mubr.msk.f32.vlgmr.msra.gmra.mrb[2].mxu1 %vm302_vm0, %v1565_v38  ;;  %v877_v41 = vsel %vm302_vm0, %v755_v40, 2147483647  ;;  %vm439_vm2 = vcmask 334856  }
 0x55b   : > { %867 = vmin.xlane.f32.xlu0 %v866_v39  ;;  %v879_v42 = vshra.s32 %v877_v41, 16  ;;  %1701 = vmatpush3.bf16.msra.mxu1 %v1959_v4  ;;  %v878_v49 = vand.u32 65535, %v877_v41 }
 0x55c   : > { %1707 = vmatprep.subr.bf16.mxu1 %v1959_v4 }
 0x55d   : > { %v881_v43 = vcvt.s32.f32 %v879_v42  ;;  %v880_v53 = vcvt.s32.f32 %v878_v49 }
 0x55f   : > { %882 = vmin.xlane.f32.xlu1 %v881_v43 }
 0x5e8   : > { %v868_v47 = vpop.xlane.xlu0 %867 }
 0x5e9   : > { %vm869_vm3 = vcmp.eq.f32.partialorder %v866_v39, %v868_v47  ;;  %v874_v59 = vcvt.f32.s32 %v868_v47 }
 0x5ea   : > { %v870_v50 = vsel %vm869_vm3, %v865_v48, inf  ;;  %vm482_vm3 = vcmask 343368  }
 0x5eb   : > { %871 = vmin.xlane.f32.xlu0 %v870_v50  ;;  %v875_v61 = vshll.u32 %v874_v59, 16 }
 0x5ec   : > { %v883_v51 = vpop.xlane.xlu1 %882 }
 0x5ed   : > { %vm884_vm4 = vcmp.eq.f32.partialorder %v881_v43, %v883_v51  ;;  %v889_v62 = vcvt.f32.s32 %v883_v51 }
 0x5ee   : > { %v885_v55 = vsel %vm884_vm4, %v880_v53, inf }
 0x5ef   : > { %886 = vmin.xlane.f32.xlu1 %v885_v55  ;;  %v890_v2 = vshll.u32 %v889_v62, 16 }
 0x62d   : > { %v2052_v56 = vpop.f32.mrb[2].mxu1 }
 0x62e   : > { %v2054_v57 = vpop.f32.mrb[3].mxu1 }
 0x678   : > { %v872_v60 = vpop.xlane.xlu0 %871 }
 0x679   : > { %v873_v63 = vcvt.f32.s32 %v872_v60 }
 0x67b   : > { %v2056_v0 = vadd.s32 %v875_v61, %v873_v63 }
 0x67c   : > { %v887_v1 = vpop.xlane.xlu1 %886 }
 0x67d   : > { %v892_v3 = vand.u32 15, %v2056_v0  ;;  %v888_v5 = vcvt.f32.s32 %v887_v1 }
 0x67f   : > { %v2059_v6 = vadd.s32 %v890_v2, %v888_v5  ;;  %vm894_vm5 = vcmp.eq.s32.totalorder %v1967_v19, %v892_v3 }
 0x680   : > { %v1568_v7 = vsel %vm894_vm5, 1.0, %v1861_v54  ;;  %v896_v8 = vsel %vm894_vm5, 2147483647, %v754_v34  ;;  %vm578_vm5 = vcmask 671056  }
 0x681   : > { %v893_v9 = vand.u32 15, %v2059_v6  ;;  %1654 = vmatprep.mubr.msk.f32.mxu0 %vm302_vm0, %v1568_v7  ;;  %v1001_v10 = vsel %vm302_vm0, %v896_v8, 2147483647 }
 0x682   : > { %v1003_v11 = vshra.s32 %v1001_v10, 16  ;;  %v1002_v24 = vand.u32 65535, %v1001_v10 }
 0x683   : > { %vm895_vm6 = vcmp.eq.s32.totalorder %v1967_v19, %v893_v9 }
 0x684   : > { %v1569_v14 = vsel %vm895_vm6, 1.0, %v1861_v54  ;;  %v1005_v15 = vcvt.s32.f32 %v1003_v11  ;;  %v897_v16 = vsel %vm895_vm6, 2147483647, %v755_v40  ;;  %v1004_v28 = vcvt.s32.f32 %v1002_v24 }
 0x685   : > { %1655 = vmatmul.mubr.msk.f32.vlgmr.msra.gmra.mrb[4].mxu0 %vm302_vm0, %v1569_v14  ;;  %v1016_v21 = vsel %vm302_vm0, %v897_v16, 2147483647  ;;  %vm858_vm6 = vcmask 293888  }
 0x686   : > { %1006 = vmin.xlane.f32.xlu0 %v1005_v15  ;;  %v1018_v22 = vshra.s32 %v1016_v21, 16  ;;  %1705 = vmatpush3.bf16.msra.mxu0 %v1959_v4  ;;  %v1017_v29 = vand.u32 65535, %v1016_v21 }
 0x688   : > { %v1020_v23 = vcvt.s32.f32 %v1018_v22  ;;  %v1019_v33 = vcvt.s32.f32 %v1017_v29 }
 0x68a   : > { %1021 = vmin.xlane.f32.xlu1 %v1020_v23 }
 0x713   : > { %v1007_v26 = vpop.xlane.xlu0 %1006 }
 0x714   : > { %vm1008_vm7 = vcmp.eq.f32.partialorder %v1005_v15, %v1007_v26  ;;  %v1013_v37 = vcvt.f32.s32 %v1007_v26 }
 0x715   : > { %v1009_v30 = vsel %vm1008_vm7, %v1004_v28, inf }
 0x716   : > { %1010 = vmin.xlane.f32.xlu0 %v1009_v30  ;;  %v1014_v39 = vshll.u32 %v1013_v37, 16 }
 0x717   : > { %v1022_v31 = vpop.xlane.xlu1 %1021 }
 0x718   : > { %vm1023_vm8 = vcmp.eq.f32.partialorder %v1020_v23, %v1022_v31  ;;  %v1028_v40 = vcvt.f32.s32 %v1022_v31 }
 0x719   : > { %v1024_v34 = vsel %vm1023_vm8, %v1019_v33, inf  ;;  %vm621_vm8 = vcmask 679568  }
 0x71a   : > { %1025 = vmin.xlane.f32.xlu1 %v1024_v34  ;;  %v1029_v44 = vshll.u32 %v1028_v40, 16 }
 0x758   : > { %v2071_v35 = vpop.f32.mrb[4].mxu0 }
 0x759   : > { %v2073_v36 = vpop.f32.mrb[5].mxu0 }
 0x7a3   : > { %v1011_v38 = vpop.xlane.xlu0 %1010 }
 0x7a4   : > { %v1012_v41 = vcvt.f32.s32 %v1011_v38 }
 0x7a6   : > { %v2075_v42 = vadd.s32 %v1014_v39, %v1012_v41 }
 0x7a7   : > { %v1026_v43 = vpop.xlane.xlu1 %1025 }
 0x7a8   : > { %v1031_v47 = vand.u32 15, %v2075_v42  ;;  %v1027_v48 = vcvt.f32.s32 %v1026_v43 }
 0x7aa   : > { %v2078_v49 = vadd.s32 %v1029_v44, %v1027_v48  ;;  %vm1033_vm9 = vcmp.eq.s32.totalorder %v1967_v19, %v1031_v47 }
 0x7ab   : > { %v1572_v50 = vsel %vm1033_vm9, 1.0, %v1861_v54  ;;  %v1035_v51 = vsel %vm1033_vm9, 2147483647, %v896_v8  ;;  %vm902_vm9 = vcmask 302368  }
 0x7ac   : > { %v1032_v53 = vand.u32 15, %v2078_v49  ;;  %1661 = vmatprep.mubr.msk.f32.mxu1 %vm302_vm0, %v1572_v50  ;;  %v1140_v55 = vsel %vm302_vm0, %v1035_v51, 2147483647 }
 0x7ad   : > { %v1142_v59 = vshra.s32 %v1140_v55, 16  ;;  %v1141_v3 = vand.u32 65535, %v1140_v55 }
 0x7ae   : > { %vm1034_vm10 = vcmp.eq.s32.totalorder %v1967_v19, %v1032_v53 }
 0x7af   : > { %v1573_v60 = vsel %vm1034_vm10, 1.0, %v1861_v54  ;;  %v1144_v61 = vcvt.s32.f32 %v1142_v59  ;;  %v1036_v62 = vsel %vm1034_vm10, 2147483647, %v897_v16  ;;  %v1143_v7 = vcvt.s32.f32 %v1141_v3 }
 0x7b0   : > { %1662 = vmatmul.mubr.msk.f32.vlgmr.msra.gmra.mrb[4].mxu1 %vm302_vm0, %v1573_v60  ;;  %v1155_v63 = vsel %vm302_vm0, %v1036_v62, 2147483647  ;;  %vm717_vm10 = vcmask 1007256  }
 0x7b1   : > { %1145 = vmin.xlane.f32.xlu0 %v1144_v61  ;;  %v1157_v1 = vshra.s32 %v1155_v63, 16  ;;  %1709 = vmatpush3.bf16.msra.mxu1 %v1959_v4  ;;  %v1156_v8 = vand.u32 65535, %v1155_v63 }
 0x7b3   : > { %v1159_v2 = vcvt.s32.f32 %v1157_v1  ;;  %v1158_v11 = vcvt.s32.f32 %v1156_v8 }
 0x7b5   : > { %1160 = vmin.xlane.f32.xlu1 %v1159_v2 }
 0x83e   : > { %v1146_v5 = vpop.xlane.xlu0 %1145 }
 0x83f   : > { %vm1147_vm11 = vcmp.eq.f32.partialorder %v1144_v61, %v1146_v5  ;;  %v1152_v21 = vcvt.f32.s32 %v1146_v5 }
 0x840   : > { %v1148_v9 = vsel %vm1147_vm11, %v1143_v7, inf  ;;  %vm760_vm11 = vcmask 1015768  }
 0x841   : > { %1149 = vmin.xlane.f32.xlu0 %v1148_v9  ;;  %v1153_v23 = vshll.u32 %v1152_v21, 16  ;;  %v756_v21 = vshra.s32 %v2036_v27, 4 }
 0x842   : > { %v1161_v10 = vpop.xlane.xlu1 %1160 }
 0x843   : > { %vm1162_vm12 = vcmp.eq.f32.partialorder %v1159_v2, %v1161_v10  ;;  %v1167_v4 = vcvt.f32.s32 %v1161_v10 }
 0x844   : > { %v1163_v14 = vsel %vm1162_vm12, %v1158_v11, inf  ;;  %vm856_vm12 = vcmask 1048544  }
 0x845   : > { %1164 = vmin.xlane.f32.xlu1 %v1163_v14  ;;  %v1168_v29 = vshll.u32 %v1167_v4, 16 }
 0x883   : > { %v1663_v15 = vpop.f32.mrb[4].mxu1 }
 0x884   : > { %v1120_v16 = vpop.f32.mrb[5].mxu1 }
 0x8ce   : > { %v1150_v22 = vpop.xlane.xlu0 %1149 }
 0x8cf   : > { %v1151_v24 = vcvt.f32.s32 %v1150_v22 }
 0x8d1   : > { %v2090_v26 = vadd.s32 %v1153_v23, %v1151_v24  ;;  %v1037_v23 = vshra.s32 %v2075_v42, 4 }
 0x8d2   : > { %v1165_v28 = vpop.xlane.xlu1 %1164 }
 0x8d3   : > { %v1170_v30 = vand.u32 15, %v2090_v26  ;;  %v1166_v31 = vcvt.f32.s32 %v1165_v28  ;;  %v1039_v42 = vcvt.s32.f32 %v1037_v23  ;;  %v1176_v28 = vshra.s32 %v2090_v26, 4 }
 0x8d4   : > { %v899_v26 = vshra.s32 %v2059_v6, 4 }
 0x8d5   : > { %v2093_v33 = vadd.s32 %v1168_v29, %v1166_v31  ;;  %vm1172_vm13 = vcmp.eq.s32.totalorder %v1967_v19, %v1170_v30  ;;  %v1178_v31 = vcvt.s32.f32 %v1176_v28 }
 0x8d6   : > { %v1576_v34 = vsel %vm1172_vm13, 1.0, %v1861_v54  ;;  %v1174_v37 = vsel %vm1172_vm13, 2147483647, %v1035_v51  ;;  %vm998_vm13 = vcmask 630056  }
 0x8d7   : > { %v1171_v38 = vand.u32 15, %v2093_v33  ;;  %1668 = vmatprep.mubr.msk.f32.mxu0 %vm302_vm0, %v1576_v34  ;;  %v1282_v39 = vsel %vm302_vm0, %v1174_v37, 2147483647 }
 0x8d8   : > { %v1284_v40 = vshra.s32 %v1282_v39, 16  ;;  %v1283_v51 = vand.u32 65535, %v1282_v39  ;;  %v1038_v39 = vshra.s32 %v2078_v49, 4 }
 0x8d9   : > { %vm1173_vm14 = vcmp.eq.s32.totalorder %v1967_v19, %v1171_v38  ;;  %v901_v38 = vcvt.s32.f32 %v899_v26 }
 0x8da   : > { %v1577_v41 = vsel %vm1173_vm14, 1.0, %v1861_v54  ;;  %v1286_v43 = vcvt.s32.f32 %v1284_v40  ;;  %v1175_v44 = vsel %vm1173_vm14, 2147483647, %v1036_v62  ;;  %v1285_v55 = vcvt.s32.f32 %v1283_v51 }
 0x8db   : > { %1669 = vmatmul.mubr.msk.f32.vlgmr.msra.gmra.mrb[6].mxu0 %vm302_vm0, %v1577_v41  ;;  %v1297_v47 = vsel %vm302_vm0, %v1175_v44, 2147483647  ;;  %v479_v62 = vshra.s32 %v1999_v25, 4  ;;  %v898_v25 = vshra.s32 %v2056_v0, 4  ;;  %v618_v0 = vshra.s32 %v2019_v58, 4 }
 0x8dc   : > { %1287 = vmin.xlane.f32.xlu0 %v1286_v43  ;;  %v1299_v48 = vshra.s32 %v1297_v47, 16  ;;  %v1298_v59 = vand.u32 65535, %v1297_v47  ;;  %vm1041_vm14 = vcmask 638568   ;;  %v757_v58 = vshra.s32 %v2039_v32, 4 }
 0x8dd   : > { %v481_v10 = vcvt.s32.f32 %v479_v62  ;;  %v900_v22 = vcvt.s32.f32 %v898_v25  ;;  %v1040_v6 = vcvt.s32.f32 %v1038_v39  ;;  %v1177_v41 = vshra.s32 %v2093_v33, 4 }
 0x8de   : > { %v1301_v50 = vcvt.s32.f32 %v1299_v48  ;;  %v1300_v63 = vcvt.s32.f32 %v1298_v59  ;;  %v759_v32 = vcvt.s32.f32 %v757_v58 }
 0x8df   : > { %v1179_v44 = vcvt.s32.f32 %v1177_v41 }
 0x8e0   : > { %1302 = vmin.xlane.f32.xlu1 %v1301_v50 }
 0x969   : > { %v1288_v53 = vpop.xlane.xlu0 %1287 }
 0x96a   : > { %vm1289_vm15 = vcmp.eq.f32.partialorder %v1286_v43, %v1288_v53 }
 0x96b   : > { %v1290_v60 = vsel %vm1289_vm15, %v1285_v55, inf  ;;  %vm1180_vm15 = vcmask 974768  }
 0x96c   : > { %1291 = vmin.xlane.f32.xlu0 %v1290_v60 }
 0x96d   : > { %v1303_v61 = vpop.xlane.xlu1 %1302 }
 0x96e   : > { %vm1304_vm1 = vcmp.eq.f32.partialorder %v1301_v50, %v1303_v61 }
 0x96f   : > { %v1305_v1 = vsel %vm1304_vm1, %v1300_v63, inf  ;;  %vm1276_vm1 = vcmask 1048504  }
 0x970   : > { %1306 = vmin.xlane.f32.xlu1 %v1305_v1 }
 0x981   : > { %435 = vrot.lane.b32.xlu1 %v1992_v12, %s1862_s19 }
 0x982   : > { %433 = vrot.lane.b32.xlu0 %v1994_v13, %s1862_s19  ;;  %s1784_s19 = sshll.u32 %s1870_s11, 4  ;;  %s1785_s19 = int_to_ptr.vmem [resolvable:$false] %s1784_s19 }
 0x983   : > { %p1787_p1 = scmp.lt.s32.totalorder %s2205_s5, %s1785_s19 }
 0x985   : > { %572 = vrot.lane.b32.xlu1 %v2014_v46, %s1863_s21  ;;  %v478_v46 = vshra.s32 %v1996_v20, 4  ;;  %v617_v20 = vshra.s32 %v2016_v52, 4 }
 0x986   : > { %711 = vrot.lane.b32.xlu0 %v2034_v18, %s1864_s23 }
 0x987   : > { %v619_v52 = vcvt.s32.f32 %v617_v20 }
 0x989   : > { %574 = vrot.lane.b32.xlu1 %v2012_v45, %s1863_s21  ;;  %v1294_v45 = vcvt.f32.s32 %v1288_v53  ;;  %s1786_s21 = scalar_lea.vmem %s1785_s19, 1536 }
 0x98a   : > { %850 = vrot.lane.b32.xlu0 %v2054_v57, %s1865_s26  ;;  %v1309_v57 = vcvt.f32.s32 %v1303_v61  ;;  %p1788_p2 = scmp.lt.s32.totalorder %s1786_s21, %s1780_s15 }
 0x98b   : > { %v1295_v18 = vshll.u32 %v1294_v45, 16 }
 0x98c   : > { %v1310_v5 = vshll.u32 %v1309_v57, 16  ;;  %p1789_p3 = por %p1788_p2, %p1787_p1 }
 0x98d   : > { %713 = vrot.lane.b32.xlu1 %v2032_v17, %s1864_s23 }
 0x98e   : > { %992 = vrot.lane.b32.xlu0 %v2073_v36, %s1866_s27  ;;  %p1790_p5 = pnand %p1789_p3, %p1783_p0 }
 0x991   : > { %852 = vrot.lane.b32.xlu1 %v2052_v56, %s1865_s26 }
 0x992   : > { %1131 = vrot.lane.b32.xlu0 %v1120_v16, %s1867_s28 }
 0x995   : > { %994 = vrot.lane.b32.xlu1 %v2071_v35, %s1866_s27  ;;  %v480_v35 = vcvt.s32.f32 %v478_v46 }
 0x999   : > { %1133 = vrot.lane.b32.xlu1 %v1663_v15, %s1867_s28 }
 0x9ae   : > { %v1670_v12 = vpop.f32.mrb[6].mxu0 }
 0x9af   : > { %1272 = vrot.lane.b32.xlu1 %v1670_v12, %s1868_s29  ;;  %v1259_v13 = vpop.f32.mrb[7].mxu0 }
 0x9b0   : > { %1270 = vrot.lane.b32.xlu0 %v1259_v13, %s1868_s29 }
 0x9f9   : > { %v1292_v17 = vpop.xlane.xlu0 %1291 }
 0x9fa   : > { %v1293_v36 = vcvt.f32.s32 %v1292_v17 }
 0x9fc   : > { %v2115_v56 = vadd.s32 %v1295_v18, %v1293_v36 }
 0x9fd   : > { %v1307_v2 = vpop.xlane.xlu1 %1306  ;;  %v434_v3 = vpop.permute.xlu0 %433 }
 0x9fe   : > { %v1312_v7 = vand.u32 15, %v2115_v56  ;;  %v1308_v8 = vcvt.f32.s32 %v1307_v2  ;;  %440 = vst.msk [vmem:[%s1980_s18] sm:$0xff] %vm439_vm2, %v434_v3  ;;  %v1316_v33 = vshra.s32 %v2115_v56, 4 }
 0x9ff   : > { %483 = vst.msk [vmem:[%s1980_s18] sm:$0xff] %vm482_vm3, %v480_v35 }
 0xa00   : > { %v2124_v9 = vadd.s32 %v1310_v5, %v1308_v8  ;;  %vm1314_vm4 = vcmp.eq.s32.totalorder %v1967_v19, %v1312_v7  ;;  %v1318_v51 = vcvt.s32.f32 %v1316_v33 }
 0xa01   : > { %v436_v11 = vpop.permute.xlu1 %435  ;;  %v712_v14 = vpop.permute.xlu0 %711  ;;  %v1580_v15 = vsel %vm1314_vm4, 1.0, %v1861_v54  ;;  %vm1416_vm4 = vcmask 589056  }
 0xa02   : > { %v1313_v16 = vand.u32 15, %v2124_v9  ;;  %441 = vst.msk [vmem:[%s1980_s18 + $0x18] sm:$0xff] %vm439_vm2, %v436_v11  ;;  %1675 = vmatprep.mubr.msk.f32.mxu1 %vm302_vm0, %v1580_v15  ;;  %v1317_v47 = vshra.s32 %v2124_v9, 4  ;;  %vm1278_vm2 = vcmask 252928  }
 0xa03   : > { %484 = vst.msk [vmem:[%s1980_s18 + $0x18] sm:$0xff] %vm482_vm3, %v481_v10  ;;  %vm1320_vm3 = vcmask 261368  }
 0xa04   : > { %vm1315_vm7 = vcmp.eq.s32.totalorder %v1967_v19, %v1313_v16  ;;  %v758_v19 = vcvt.s32.f32 %v756_v21  ;;  %v1319_v48 = vcvt.s32.f32 %v1317_v47 }
 0xa05   : > { %v573_v4 = vpop.permute.xlu1 %572  ;;  %v851_v27 = vpop.permute.xlu0 %850  ;;  %v1581_v24 = vsel %vm1315_vm7, 1.0, %v1861_v54  ;;  %v620_v54 = vcvt.s32.f32 %v618_v0 }
 0xa06   : > { %579 = vst.msk [vmem:[%s1980_s18] sm:$0xff] %vm578_vm5, %v573_v4  ;;  %1676 = vmatmul.mubr.msk.f32.vlgmr.msra.gmra.mrb[6].mxu1 %vm302_vm0, %v1581_v24  ;;  %vm1137_vm0 = vcmask 966256  }
 0xa07   : > { %859 = vst.msk [vmem:[%s1980_s18 + $0x8] sm:$0xff] %vm858_vm6, %v851_v27 }
 0xa08   : > { %622 = vst.msk [vmem:[%s1980_s18] sm:$0xff] %vm621_vm8, %v619_v52 }
 0xa09   : > { %903 = vst.msk [vmem:[%s1980_s18 + $0x8] sm:$0xff] %vm902_vm9, %v900_v22  ;;  %v575_v29 = vpop.permute.xlu1 %574  ;;  %v993_v30 = vpop.permute.xlu0 %992 }
 0xa0a   : > { %718 = vst.msk [vmem:[%s1980_s18] sm:$0xff] %vm717_vm10, %v712_v14 }
 0xa0b   : > { %761 = vst.msk [vmem:[%s1980_s18] sm:$0xff] %vm760_vm11, %v758_v19 }
 0xa0c   : > { %857 = vst.msk [vmem:[%s1980_s18] sm:$0xff] %vm856_vm12, %v851_v27 }
 0xa0d   : > { %580 = vst.msk [vmem:[%s1980_s18 + $0x18] sm:$0xff] %vm578_vm5, %v575_v29  ;;  %v714_v34 = vpop.permute.xlu1 %713  ;;  %v1132_v37 = vpop.permute.xlu0 %1131 }
 0xa0e   : > { %999 = vst.msk [vmem:[%s1980_s18 + $0x8] sm:$0xff] %vm998_vm13, %v993_v30 }
 0xa0f   : > { %623 = vst.msk [vmem:[%s1980_s18 + $0x18] sm:$0xff] %vm621_vm8, %v620_v54 }
 0xa10   : > { %1042 = vst.msk [vmem:[%s1980_s18 + $0x8] sm:$0xff] %vm1041_vm14, %v1039_v42 }
 0xa11   : > { %719 = vst.msk [vmem:[%s1980_s18 + $0x18] sm:$0xff] %vm717_vm10, %v714_v34  ;;  %v853_v40 = vpop.permute.xlu1 %852 }
 0xa12   : > { %1138 = vst.msk [vmem:[%s1980_s18 + $0x8] sm:$0xff] %vm1137_vm0, %v1132_v37 }
 0xa13   : > { %762 = vst.msk [vmem:[%s1980_s18 + $0x18] sm:$0xff] %vm760_vm11, %v759_v32 }
 0xa14   : > { %1181 = vst.msk [vmem:[%s1980_s18 + $0x8] sm:$0xff] %vm1180_vm15, %v1178_v31 }
 0xa15   : > { %860 = vst.msk [vmem:[%s1980_s18 + $0x18] sm:$0xff] %vm856_vm12, %v853_v40  ;;  %v995_v43 = vpop.permute.xlu1 %994 }
 0xa16   : > { %861 = vst.msk [vmem:[%s1980_s18 + $0x20] sm:$0xff] %vm858_vm6, %v853_v40 }
 0xa17   : > { %904 = vst.msk [vmem:[%s1980_s18 + $0x20] sm:$0xff] %vm902_vm9, %v901_v38 }
 0xa18   : > { %1000 = vst.msk [vmem:[%s1980_s18 + $0x20] sm:$0xff] %vm998_vm13, %v995_v43 }
 0xa19   : > { %1043 = vst.msk [vmem:[%s1980_s18 + $0x20] sm:$0xff] %vm1041_vm14, %v1040_v6  ;;  %v1134_v49 = vpop.permute.xlu1 %1133 }
 0xa1a   : > { %1139 = vst.msk [vmem:[%s1980_s18 + $0x20] sm:$0xff] %vm1137_vm0, %v1134_v49 }
 0xa1b   : > { %1182 = vst.msk [vmem:[%s1980_s18 + $0x20] sm:$0xff] %vm1180_vm15, %v1179_v44 }
 0xa21   : > { %v1273_v50 = vpop.permute.xlu1 %1272 }
 0xa22   : > { %1280 = vst.msk [vmem:[%s1980_s18 + $0x20] sm:$0xff] %vm1276_vm1, %v1273_v50  ;;  %v1271_v53 = vpop.permute.xlu0 %1270 }
 0xa23   : > { %1281 = vst.msk [vmem:[%s1980_s18 + $0x28] sm:$0xff] %vm1278_vm2, %v1273_v50  ;;  %1279 = vst.msk [vmem:[%s1980_s18 + $0x10] sm:$0xff] %vm1278_vm2, %v1271_v53 }
 0xa24   : > { %1322 = vst.msk [vmem:[%s1980_s18 + $0x28] sm:$0xff] %vm1320_vm3, %v1319_v48  ;;  %1321 = vst.msk [vmem:[%s1980_s18 + $0x10] sm:$0xff] %vm1320_vm3, %v1318_v51 }
 0xa25   : > { %1277 = vst.msk [vmem:[%s1980_s18 + $0x8] sm:$0xff] %vm1276_vm1, %v1271_v53 }
 0xad9   : > { %v1677_v55 = vpop.f32.mrb[6].mxu1 }
 0xada   : > { %1412 = vrot.lane.b32.xlu1 %v1677_v55, %s1869_s30  ;;  %v1399_v59 = vpop.f32.mrb[7].mxu1 }
 0xadb   : > { %1410 = vrot.lane.b32.xlu0 %v1399_v59, %s1869_s30 }
 0xb4c   : > { %v1413_v60 = vpop.permute.xlu1 %1412 }
 0xb4d   : > { %1418 = vst.msk [vmem:[%s1980_s18 + $0x28] sm:$0xff] %vm1416_vm4, %v1413_v60  ;;  %v1411_v61 = vpop.permute.xlu0 %1410 }
 0xb4e   : > { %1417 = vst.msk [vmem:[%s1980_s18 + $0x10] sm:$0xff] %vm1416_vm4, %v1411_v61 }
 0xb4f   : > { %1793 = shalt.err (!%p1790_p5)
}
 0xb50   : > { %s1794_s10 = scalar_lea.hbm %s2203_s8, 768  ;;  %s1798_s26 = scalar_lea.hbm %s2260_s3, 1536 }
 0xb51   : > { %p1795_p6 = scmp.ne.s32.totalorder %s2203_s8, %s1794_s10  ;;  %p1799_p10 = scmp.lt.u32.totalorder %s2203_s8, %s2260_s3 }
 0xb52   : > { %p1800_p11 = scmp.lt.u32.totalorder %s1798_s26, %s1794_s10  ;;  %p1802_p13 = scmp.lt.u32.totalorder %s1794_s10, %s2203_s8 }
 0xb53   : > { %p1796_p7 = pnand %p1795_p6, %p1933_p4 }
 0xb54   : > { %p1801_p12 = por %p1800_p11, %p1799_p10 }
 0xb55   : > { %p1797_p9 = pneg %p1796_p7 }
 0xb56   : > { %p1803_p0 = por %p1802_p13, %p1801_p12 }
 0xb58   : > { %p1804_p1 = pnand %p1803_p0, %p1797_p9 }
 0xb5a   : > { %1807 = shalt.err (!%p1804_p1)
}
 0xb5b   : > { %s1871_s29 = smov 384   ;;  %s1872_s30 = smov 24  }
 0xb5c   : > { %1712 = dma.vmem_to_hbm [thread:$0]  (%p1933_p4), %s2205_s5, 768, %s2203_s8, %s2211_s9, %s1871_s29, %s1871_s29, %s1872_s30  }
 0xb5d PF: > { %p1718_p2 = scmp.ge.s32.totalorder %s1858_s17, 2  ;;  %s1451_s4 = sand.u32 1, %s1838_s12  }
 0xb5e   : > { %s1452_s6 = scalar_lea.sflag [#allocation3], %s1451_s4 }
 0xb5f   : > { %p1715_p3 = pnand %p1718_p2, %p1940_p8 }
 0xb61   : > { %1833 = dma.done.wait (!%p1715_p3), %s1452_s6, 768  }
 0xb62   : > { %1835 = vsyncadd (!%p1715_p3), %s1452_s6, 4294966528  ;;  %s16_s17 = sadd.s32 1, %s1858_s17   ;;  %s2263_s12 = smov %s1842_s13 }
 0xb63   : > { %p13_p5 = scmp.ge.s32.totalorder %s16_s17, 4   ;;  %s2264_s13 = smov %s1846_s14 }
 0xb64   : > { %s2265_s14 = smov %s1946_s25  ;;  %s2266_s15 = smov %s1854_s16 }
 0xb65   : > { %s2267_s16 = smov %s2269_s20  ;;  %15 = sbr.rel (!%p13_p5) target bundleno = 4 (0x4), region = 73 }
 0xb6c   :  { %1457 = vsyncpa [#allocation3], 1 }
 0xb6d   :  { %1459 = vsyncpa [#allocation3 + $0x1], 1 }

</bundles_post_ra>
